<compile_context>
chip_gen: v7x
topology: tpu7x:2x2x1
jax: 0.10.0
libtpu: 0.0.40
codegen_flags: <defaults>
</compile_context>

<pallas_src>
import functools

import jax
import jax.numpy as jnp
from jax.experimental import pallas as pl
from jax.experimental.pallas import tpu as pltpu


def bengio_kernel(x_ref, y_ref, cw_ref, b1_ref, w2_ref, b2_ref,
                  preds_ref, nll_ref, *, ctx, vocab):
    tile_b = x_ref.shape[0]
    kdim = cw_ref.shape[0]          # ctx * vocab (256)
    vpad = w2_ref.shape[1]          # padded vocab / lane width (128)

    x = x_ref[...]                  # (tile_b, ctx) int32

    # --- fused embedding gather + first matmul -------------------------------
    # Concatenated one-hot (tile_b, ctx*vocab): lane t*vocab+v is hot iff
    # x[:, t] == v.  Then  emb @ W1 == onehot @ CW  as ONE K=256 MXU push.
    lane_k = jax.lax.broadcasted_iota(jnp.int32, (tile_b, kdim), 1)
    onehot = jnp.zeros((tile_b, kdim), jnp.float32)
    for t in range(ctx):            # static unroll; lane-dense VPU compares
        onehot = onehot + (lane_k == (x[:, t:t + 1] + t * vocab)).astype(
            jnp.float32)

    acc = jnp.dot(onehot, cw_ref[...], preferred_element_type=jnp.float32)
    h = jnp.tanh(acc + b1_ref[...])                       # (tile_b, 128)

    # --- output layer (vocab padded to 128 lanes; padded logits are exactly 0)
    logits = jnp.dot(h, w2_ref[...],
                     preferred_element_type=jnp.float32) + b2_ref[...]

    lane_v = jax.lax.broadcasted_iota(jnp.int32, (tile_b, vpad), 1)
    valid = lane_v < vocab
    m = jnp.max(jnp.where(valid, logits, -1e30), axis=1, keepdims=True)
    e = jnp.where(valid, jnp.exp(logits - m), 0.0)
    inv_denom = pl.reciprocal(jnp.sum(e, axis=1, keepdims=True), approx=False)
    preds = e * inv_denom                                  # pad lanes stay 0.0
    preds_ref[...] = preds                                 # unmasked 128-lane store

    # --- CrossEntropy on the *probabilities* (matches the PyTorch module) ----
    #   nll_i = logsumexp(preds_i) - preds[i, y_i]   (preds in [0,1] -> no shift)
    lse = jnp.log(jnp.sum(jnp.where(valid, jnp.exp(preds), 0.0),
                          axis=1, keepdims=True))
    sel = jnp.sum(jnp.where(lane_v == y_ref[...], preds, 0.0),
                  axis=1, keepdims=True)
    nll_ref[...] = lse - sel


def bengio_forward(x, y, C, W1, b1, W2, b2, *, tile_b=1024):
    """x: (B, context_len) int, y: (B,) int. Returns (preds, loss)."""
    B, ctx = x.shape
    vocab, feat = C.shape
    hidden = W1.shape[1]

    HID_PAD = 128
    VOC_PAD = 128
    assert hidden <= HID_PAD and vocab <= VOC_PAD

    tile_b = min(tile_b, B)
    assert B % tile_b == 0 and tile_b % 8 == 0, \
        "batch must be divisible by the batch tile and the tile by 8"
    num_tiles = B // tile_b

    Cf = C.astype(jnp.float32)
    W1f = W1.astype(jnp.float32)

    # Grid-invariant hoist: CW[t*vocab + v, :] = C[v] @ W1[t*feat:(t+1)*feat, :]
    cw = jnp.einsum('vf,tfh->tvh', Cf,
                    W1f.reshape(ctx, feat, hidden)).reshape(ctx * vocab, hidden)
    cw = jnp.pad(cw, ((0, 0), (0, HID_PAD - hidden)))                 # (256, 128)
    b1p = jnp.pad(b1.astype(jnp.float32),
                  (0, HID_PAD - hidden)).reshape(1, HID_PAD)          # (1, 128)
    w2p = jnp.pad(W2.astype(jnp.float32),
                  ((0, HID_PAD - hidden), (0, VOC_PAD - vocab)))      # (128, 128)
    b2p = jnp.pad(b2.astype(jnp.float32),
                  (0, VOC_PAD - vocab)).reshape(1, VOC_PAD)           # (1, 128)

    x_i32 = x.astype(jnp.int32)
    y_2d = y.reshape(B, 1).astype(jnp.int32)

    preds_pad, nll = pl.pallas_call(
        functools.partial(bengio_kernel, ctx=ctx, vocab=vocab),
        out_shape=(
            jax.ShapeDtypeStruct((B, VOC_PAD), jnp.float32),   # padded preds
            jax.ShapeDtypeStruct((B, 1), jnp.float32),         # per-row NLL
        ),
        grid=(num_tiles,),
        in_specs=[
            pl.BlockSpec((tile_b, ctx), lambda i: (i, 0)),            # x
            pl.BlockSpec((tile_b, 1), lambda i: (i, 0)),              # y
            pl.BlockSpec((ctx * vocab, HID_PAD), lambda i: (0, 0)),   # CW (resident)
            pl.BlockSpec((1, HID_PAD), lambda i: (0, 0)),             # b1
            pl.BlockSpec((HID_PAD, VOC_PAD), lambda i: (0, 0)),       # W2 (resident)
            pl.BlockSpec((1, VOC_PAD), lambda i: (0, 0)),             # b2
        ],
        out_specs=(
            pl.BlockSpec((tile_b, VOC_PAD), lambda i: (i, 0)),        # preds (padded)
            pl.BlockSpec((tile_b, 1), lambda i: (i, 0)),              # nll per row
        ),
        compiler_params=pltpu.CompilerParams(
            # No cross-tile dependency -> megacore sharding on v7x is safe.
            dimension_semantics=("parallel",)),
    )(x_i32, y_2d, cw, b1p, w2p, b2p)

    preds = preds_pad[:, :vocab]
    loss = jnp.mean(nll)
    return preds, loss


def reference_forward(x, y, C, W1, b1, W2, b2):
    """Pure-JAX reference mirroring the PyTorch module exactly."""
    B = x.shape[0]
    emb = C[x].reshape(B, -1)
    h = jnp.tanh(emb @ W1 + b1)
    logits = h @ W2 + b2
    preds = jax.nn.softmax(logits, axis=1)
    logp = jax.nn.log_softmax(preds, axis=1)          # CE applied to probs
    loss = -jnp.mean(logp[jnp.arange(B), y])
    return preds, loss


if __name__ == "__main__":
    vocab_size = 32
    context_len = 8
    feature_len = 2
    hidden = 100
    B = 8

    key = jax.random.PRNGKey(0)
    kC, kW1, kb1, kW2, kb2, kx, ky = jax.random.split(key, 7)

    # Deterministic parameter init (matches torch.randn shapes).
    C = jax.random.normal(kC, (vocab_size, feature_len), dtype=jnp.float32)
    W1 = jax.random.normal(kW1, (context_len * feature_len, hidden),
                           dtype=jnp.float32)
    b1 = jax.random.normal(kb1, (hidden,), dtype=jnp.float32)
    W2 = jax.random.normal(kW2, (hidden, vocab_size), dtype=jnp.float32)
    b2 = jax.random.normal(kb2, (vocab_size,), dtype=jnp.float32)

    x = jax.random.randint(kx, (B, context_len), 0, vocab_size, dtype=jnp.int32)
    y = jax.random.randint(ky, (B,), 0, vocab_size, dtype=jnp.int32)

    preds, loss = bengio_forward(x, y, C, W1, b1, W2, b2)
    jax.block_until_ready((preds, loss))

    preds_ref, loss_ref = reference_forward(x, y, C, W1, b1, W2, b2)
    assert preds.shape == (B, vocab_size)
    assert jnp.allclose(preds, preds_ref, atol=2e-5, rtol=2e-5)
    assert jnp.allclose(loss, loss_ref, atol=2e-5, rtol=2e-5)

    print("KERNEL_OK")
</pallas_src>

<mosaic_0001>
module attributes {stable_mosaic.version = 11 : i64} {
  func.func @bengio_kernel(%arg0: i32, %arg1: memref<8x8xi32, #tpu.memory_space<vmem>>, %arg2: memref<8x1xi32, #tpu.memory_space<vmem>>, %arg3: memref<256x128xf32, #tpu.memory_space<vmem>>, %arg4: memref<1x128xf32, #tpu.memory_space<vmem>>, %arg5: memref<128x128xf32, #tpu.memory_space<vmem>>, %arg6: memref<1x128xf32, #tpu.memory_space<vmem>>, %arg7: memref<8x128xf32, #tpu.memory_space<vmem>>, %arg8: memref<8x1xf32, #tpu.memory_space<vmem>>) attributes {dimension_semantics = [#tpu.dimension_semantics<parallel>], iteration_bounds = array<i64: 1>, scalar_prefetch = 0 : i64, scratch_operands = 0 : i64, tpu.core_type = #tpu.core_type<tc>, window_params = [{transform_indices = @transform_0, window_bounds = array<i64: 8, 8>}, {transform_indices = @transform_1, window_bounds = array<i64: 8, 1>}, {pipeline_mode = #tpu.pipeline_mode<synchronous>, transform_indices = @transform_2, window_bounds = array<i64: 256, 128>}, {pipeline_mode = #tpu.pipeline_mode<synchronous>, transform_indices = @transform_3, window_bounds = array<i64: 1, 128>}, {pipeline_mode = #tpu.pipeline_mode<synchronous>, transform_indices = @transform_4, window_bounds = array<i64: 128, 128>}, {pipeline_mode = #tpu.pipeline_mode<synchronous>, transform_indices = @transform_5, window_bounds = array<i64: 1, 128>}, {transform_indices = @transform_6, window_bounds = array<i64: 8, 128>}, {transform_indices = @transform_7, window_bounds = array<i64: 8, 1>}]} {
    %c0 = arith.constant 0 : index
    %c0_0 = arith.constant 0 : index
    %0 = vector.load %arg1[%c0, %c0_0] : memref<8x8xi32, #tpu.memory_space<vmem>>, vector<8x8xi32>
    %1 = tpu.iota {dimensions = array<i32: 1>} : vector<8x256xi32>
    %cst = arith.constant 0.000000e+00 : f32
    %2 = vector.broadcast %cst : f32 to vector<8x256xf32>
    %3 = vector.extract_strided_slice %0 {offsets = [0, 0], sizes = [8, 1], strides = [1, 1]} : vector<8x8xi32> to vector<8x1xi32>
    %c0_i32 = arith.constant 0 : i32
    %4 = vector.broadcast %c0_i32 : i32 to vector<8x1xi32>
    %5 = arith.addi %3, %4 : vector<8x1xi32>
    %6 = vector.broadcast %5 : vector<8x1xi32> to vector<8x256xi32>
    %7 = arith.cmpi eq, %1, %6 : vector<8x256xi32>
    %8 = arith.extui %7 : vector<8x256xi1> to vector<8x256xi32>
    %9 = arith.sitofp %8 : vector<8x256xi32> to vector<8x256xf32>
    %10 = arith.addf %2, %9 : vector<8x256xf32>
    %11 = vector.extract_strided_slice %0 {offsets = [0, 1], sizes = [8, 1], strides = [1, 1]} : vector<8x8xi32> to vector<8x1xi32>
    %c32_i32 = arith.constant 32 : i32
    %12 = vector.broadcast %c32_i32 : i32 to vector<8x1xi32>
    %13 = arith.addi %11, %12 : vector<8x1xi32>
    %14 = vector.broadcast %13 : vector<8x1xi32> to vector<8x256xi32>
    %15 = arith.cmpi eq, %1, %14 : vector<8x256xi32>
    %16 = arith.extui %15 : vector<8x256xi1> to vector<8x256xi32>
    %17 = arith.sitofp %16 : vector<8x256xi32> to vector<8x256xf32>
    %18 = arith.addf %10, %17 : vector<8x256xf32>
    %19 = vector.extract_strided_slice %0 {offsets = [0, 2], sizes = [8, 1], strides = [1, 1]} : vector<8x8xi32> to vector<8x1xi32>
    %c64_i32 = arith.constant 64 : i32
    %20 = vector.broadcast %c64_i32 : i32 to vector<8x1xi32>
    %21 = arith.addi %19, %20 : vector<8x1xi32>
    %22 = vector.broadcast %21 : vector<8x1xi32> to vector<8x256xi32>
    %23 = arith.cmpi eq, %1, %22 : vector<8x256xi32>
    %24 = arith.extui %23 : vector<8x256xi1> to vector<8x256xi32>
    %25 = arith.sitofp %24 : vector<8x256xi32> to vector<8x256xf32>
    %26 = arith.addf %18, %25 : vector<8x256xf32>
    %27 = vector.extract_strided_slice %0 {offsets = [0, 3], sizes = [8, 1], strides = [1, 1]} : vector<8x8xi32> to vector<8x1xi32>
    %c96_i32 = arith.constant 96 : i32
    %28 = vector.broadcast %c96_i32 : i32 to vector<8x1xi32>
    %29 = arith.addi %27, %28 : vector<8x1xi32>
    %30 = vector.broadcast %29 : vector<8x1xi32> to vector<8x256xi32>
    %31 = arith.cmpi eq, %1, %30 : vector<8x256xi32>
    %32 = arith.extui %31 : vector<8x256xi1> to vector<8x256xi32>
    %33 = arith.sitofp %32 : vector<8x256xi32> to vector<8x256xf32>
    %34 = arith.addf %26, %33 : vector<8x256xf32>
    %35 = vector.extract_strided_slice %0 {offsets = [0, 4], sizes = [8, 1], strides = [1, 1]} : vector<8x8xi32> to vector<8x1xi32>
    %c128_i32 = arith.constant 128 : i32
    %36 = vector.broadcast %c128_i32 : i32 to vector<8x1xi32>
    %37 = arith.addi %35, %36 : vector<8x1xi32>
    %38 = vector.broadcast %37 : vector<8x1xi32> to vector<8x256xi32>
    %39 = arith.cmpi eq, %1, %38 : vector<8x256xi32>
    %40 = arith.extui %39 : vector<8x256xi1> to vector<8x256xi32>
    %41 = arith.sitofp %40 : vector<8x256xi32> to vector<8x256xf32>
    %42 = arith.addf %34, %41 : vector<8x256xf32>
    %43 = vector.extract_strided_slice %0 {offsets = [0, 5], sizes = [8, 1], strides = [1, 1]} : vector<8x8xi32> to vector<8x1xi32>
    %c160_i32 = arith.constant 160 : i32
    %44 = vector.broadcast %c160_i32 : i32 to vector<8x1xi32>
    %45 = arith.addi %43, %44 : vector<8x1xi32>
    %46 = vector.broadcast %45 : vector<8x1xi32> to vector<8x256xi32>
    %47 = arith.cmpi eq, %1, %46 : vector<8x256xi32>
    %48 = arith.extui %47 : vector<8x256xi1> to vector<8x256xi32>
    %49 = arith.sitofp %48 : vector<8x256xi32> to vector<8x256xf32>
    %50 = arith.addf %42, %49 : vector<8x256xf32>
    %51 = vector.extract_strided_slice %0 {offsets = [0, 6], sizes = [8, 1], strides = [1, 1]} : vector<8x8xi32> to vector<8x1xi32>
    %c192_i32 = arith.constant 192 : i32
    %52 = vector.broadcast %c192_i32 : i32 to vector<8x1xi32>
    %53 = arith.addi %51, %52 : vector<8x1xi32>
    %54 = vector.broadcast %53 : vector<8x1xi32> to vector<8x256xi32>
    %55 = arith.cmpi eq, %1, %54 : vector<8x256xi32>
    %56 = arith.extui %55 : vector<8x256xi1> to vector<8x256xi32>
    %57 = arith.sitofp %56 : vector<8x256xi32> to vector<8x256xf32>
    %58 = arith.addf %50, %57 : vector<8x256xf32>
    %59 = vector.extract_strided_slice %0 {offsets = [0, 7], sizes = [8, 1], strides = [1, 1]} : vector<8x8xi32> to vector<8x1xi32>
    %c224_i32 = arith.constant 224 : i32
    %60 = vector.broadcast %c224_i32 : i32 to vector<8x1xi32>
    %61 = arith.addi %59, %60 : vector<8x1xi32>
    %62 = vector.broadcast %61 : vector<8x1xi32> to vector<8x256xi32>
    %63 = arith.cmpi eq, %1, %62 : vector<8x256xi32>
    %64 = arith.extui %63 : vector<8x256xi1> to vector<8x256xi32>
    %65 = arith.sitofp %64 : vector<8x256xi32> to vector<8x256xf32>
    %66 = arith.addf %58, %65 : vector<8x256xf32>
    %c0_1 = arith.constant 0 : index
    %c0_2 = arith.constant 0 : index
    %67 = vector.load %arg3[%c0_1, %c0_2] : memref<256x128xf32, #tpu.memory_space<vmem>>, vector<256x128xf32>
    %cst_3 = arith.constant dense<0.000000e+00> : vector<8x128xf32>
    %68 = tpu.matmul %66, %67, %cst_3 {dimension_numbers = #tpu.dot_dimension_numbers<[1], [0], [0], [1], [0, 0, 1, 1], [], []>} : vector<8x256xf32>, vector<256x128xf32>, vector<8x128xf32> -> vector<8x128xf32>
    %c0_4 = arith.constant 0 : index
    %c0_5 = arith.constant 0 : index
    %69 = vector.load %arg4[%c0_4, %c0_5] : memref<1x128xf32, #tpu.memory_space<vmem>>, vector<1x128xf32>
    %70 = vector.broadcast %69 : vector<1x128xf32> to vector<8x128xf32>
    %71 = arith.addf %68, %70 : vector<8x128xf32>
    %72 = math.tanh %71 : vector<8x128xf32>
    %c0_6 = arith.constant 0 : index
    %c0_7 = arith.constant 0 : index
    %73 = vector.load %arg5[%c0_6, %c0_7] : memref<128x128xf32, #tpu.memory_space<vmem>>, vector<128x128xf32>
    %cst_8 = arith.constant dense<0.000000e+00> : vector<8x128xf32>
    %74 = tpu.matmul %72, %73, %cst_8 {dimension_numbers = #tpu.dot_dimension_numbers<[1], [0], [0], [1], [0, 0, 1, 1], [], []>} : vector<8x128xf32>, vector<128x128xf32>, vector<8x128xf32> -> vector<8x128xf32>
    %c0_9 = arith.constant 0 : index
    %c0_10 = arith.constant 0 : index
    %75 = vector.load %arg6[%c0_9, %c0_10] : memref<1x128xf32, #tpu.memory_space<vmem>>, vector<1x128xf32>
    %76 = vector.broadcast %75 : vector<1x128xf32> to vector<8x128xf32>
    %77 = arith.addf %74, %76 : vector<8x128xf32>
    %78 = tpu.iota {dimensions = array<i32: 1>} : vector<8x128xi32>
    %c32_i32_11 = arith.constant 32 : i32
    %79 = vector.broadcast %c32_i32_11 : i32 to vector<8x128xi32>
    %80 = arith.cmpi slt, %78, %79 : vector<8x128xi32>
    %cst_12 = arith.constant -1.000000e+30 : f32
    %81 = vector.broadcast %cst_12 : f32 to vector<8x128xf32>
    %82 = arith.select %80, %77, %81 : vector<8x128xi1>, vector<8x128xf32>
    %cst_13 = arith.constant dense<0xFF800000> : vector<8xf32>
    %83 = vector.multi_reduction <maximumf>, %82, %cst_13 [1] : vector<8x128xf32> to vector<8xf32>
    %84 = vector.shape_cast %83 : vector<8xf32> to vector<8x1xf32>
    %85 = vector.broadcast %84 : vector<8x1xf32> to vector<8x128xf32>
    %86 = arith.subf %77, %85 : vector<8x128xf32>
    %87 = math.exp %86 : vector<8x128xf32>
    %cst_14 = arith.constant 0.000000e+00 : f32
    %88 = vector.broadcast %cst_14 : f32 to vector<8x128xf32>
    %89 = arith.select %80, %87, %88 : vector<8x128xi1>, vector<8x128xf32>
    %cst_15 = arith.constant dense<0.000000e+00> : vector<8xf32>
    %90 = vector.multi_reduction <add>, %89, %cst_15 [1] : vector<8x128xf32> to vector<8xf32>
    %91 = vector.shape_cast %90 : vector<8xf32> to vector<8x1xf32>
    %92 = tpu.reciprocal %91 : vector<8x1xf32> -> vector<8x1xf32>
    %93 = vector.broadcast %92 : vector<8x1xf32> to vector<8x128xf32>
    %94 = arith.mulf %89, %93 : vector<8x128xf32>
    %c0_16 = arith.constant 0 : index
    %c0_17 = arith.constant 0 : index
    %95 = vector.load %arg7[%c0_16, %c0_17] : memref<8x128xf32, #tpu.memory_space<vmem>>, vector<8x128xf32>
    tpu.vector_store %arg7[%c0_16, %c0_17], %94 {strides = array<i32>} : memref<8x128xf32, #tpu.memory_space<vmem>>, vector<8x128xf32>,
    %96 = math.exp %94 : vector<8x128xf32>
    %cst_18 = arith.constant 0.000000e+00 : f32
    %97 = vector.broadcast %cst_18 : f32 to vector<8x128xf32>
    %98 = arith.select %80, %96, %97 : vector<8x128xi1>, vector<8x128xf32>
    %cst_19 = arith.constant dense<0.000000e+00> : vector<8xf32>
    %99 = vector.multi_reduction <add>, %98, %cst_19 [1] : vector<8x128xf32> to vector<8xf32>
    %100 = vector.shape_cast %99 : vector<8xf32> to vector<8x1xf32>
    %101 = math.log %100 : vector<8x1xf32>
    %c0_20 = arith.constant 0 : index
    %c0_21 = arith.constant 0 : index
    %102 = vector.load %arg2[%c0_20, %c0_21] : memref<8x1xi32, #tpu.memory_space<vmem>>, vector<8x1xi32>
    %103 = vector.broadcast %102 : vector<8x1xi32> to vector<8x128xi32>
    %104 = arith.cmpi eq, %78, %103 : vector<8x128xi32>
    %cst_22 = arith.constant 0.000000e+00 : f32
    %105 = vector.broadcast %cst_22 : f32 to vector<8x128xf32>
    %106 = arith.select %104, %94, %105 : vector<8x128xi1>, vector<8x128xf32>
    %cst_23 = arith.constant dense<0.000000e+00> : vector<8xf32>
    %107 = vector.multi_reduction <add>, %106, %cst_23 [1] : vector<8x128xf32> to vector<8xf32>
    %108 = vector.shape_cast %107 : vector<8xf32> to vector<8x1xf32>
    %109 = arith.subf %101, %108 : vector<8x1xf32>
    %c0_24 = arith.constant 0 : index
    %c0_25 = arith.constant 0 : index
    %110 = vector.load %arg8[%c0_24, %c0_25] : memref<8x1xf32, #tpu.memory_space<vmem>>, vector<8x1xf32>
    tpu.vector_store %arg8[%c0_24, %c0_25], %109 {strides = array<i32>} : memref<8x1xf32, #tpu.memory_space<vmem>>, vector<8x1xf32>,
    return
  }
  func.func @transform_0(%arg0: i32) -> (i32, i32) {
    %c0_i32 = arith.constant 0 : i32
    %c0_i32_0 = arith.constant 0 : i32
    return %arg0, %c0_i32 : i32, i32
  }
  func.func @transform_1(%arg0: i32) -> (i32, i32) {
    %c0_i32 = arith.constant 0 : i32
    %c0_i32_0 = arith.constant 0 : i32
    return %arg0, %c0_i32 : i32, i32
  }
  func.func @transform_2(%arg0: i32) -> (i32, i32) {
    %c0_i32 = arith.constant 0 : i32
    %c0_i32_0 = arith.constant 0 : i32
    %c0_i32_1 = arith.constant 0 : i32
    return %c0_i32, %c0_i32_0 : i32, i32
  }
  func.func @transform_3(%arg0: i32) -> (i32, i32) {
    %c0_i32 = arith.constant 0 : i32
    %c0_i32_0 = arith.constant 0 : i32
    %c0_i32_1 = arith.constant 0 : i32
    return %c0_i32, %c0_i32_0 : i32, i32
  }
  func.func @transform_4(%arg0: i32) -> (i32, i32) {
    %c0_i32 = arith.constant 0 : i32
    %c0_i32_0 = arith.constant 0 : i32
    %c0_i32_1 = arith.constant 0 : i32
    return %c0_i32, %c0_i32_0 : i32, i32
  }
  func.func @transform_5(%arg0: i32) -> (i32, i32) {
    %c0_i32 = arith.constant 0 : i32
    %c0_i32_0 = arith.constant 0 : i32
    %c0_i32_1 = arith.constant 0 : i32
    return %c0_i32, %c0_i32_0 : i32, i32
  }
  func.func @transform_6(%arg0: i32) -> (i32, i32) {
    %c0_i32 = arith.constant 0 : i32
    %c0_i32_0 = arith.constant 0 : i32
    return %arg0, %c0_i32 : i32, i32
  }
  func.func @transform_7(%arg0: i32) -> (i32, i32) {
    %c0_i32 = arith.constant 0 : i32
    %c0_i32_0 = arith.constant 0 : i32
    return %arg0, %c0_i32 : i32, i32
  }
}

</mosaic_0001>

<bundles_post_ra>
// kernel: tpu_custom_call.1
= control target key start
LH: loop header
LB: loop body
LE: loop exit
PB: predicated region body
PF: predicated region fallthrough
CT: control target
= control target key end

     0   :  { %13 = vsyncpa [#allocation3], 0  ;;  %s836_s0 = inlined_call_operand.vmem [shape: s32[8,8], index: 0, kind: input, shape index: {}]   ;;  %s837_s1 = inlined_call_operand.vmem [shape: s32[8,1], index: 1, kind: input, shape index: {}]   ;;  %s838_s2 = inlined_call_operand.hbm [shape: f32[256,128], index: 2, kind: input, shape index: {}]   ;;  %s839_s3 = inlined_call_operand.vmem [shape: f32[1,128], index: 3, kind: input, shape index: {}]   ;;  %s840_s4 = inlined_call_operand.hbm [shape: f32[128,128], index: 4, kind: input, shape index: {}]   ;;  %s841_s5 = inlined_call_operand.vmem [shape: f32[1,128], index: 5, kind: input, shape index: {}]   ;;  %s842_s6 = inlined_call_operand.hbm [shape: f32[8,128], index: 6, kind: output, shape index: {0}]   ;;  %s843_s7 = inlined_call_operand.vmem [shape: f32[8,1], index: 7, kind: output, shape index: {1}]  }
   0x1   :  { %14 = vsyncpa [#allocation6], 0 }
   0x2   :  { %15 = vsyncpa [#allocation4], 0  ;;  %s675_s24 = smov [#allocation2]   ;;  %s603_s28 = scalar_lea.hbm %s838_s2, 4096 }
   0x3   :  { %s25_s25 = sshll.u32 %s675_s24, 4  ;;  %p604_p0 = scmp.ne.s32.totalorder %s838_s2, %s603_s28  ;;  %s26_s25 = int_to_ptr.vmem [resolvable:$true] %s25_s25 }
   0x4   :  { %p607_p1 = scmp.lt.u32.totalorder %s603_s28, %s838_s2 }
   0x6   :  { %p609_p2 = pnand %p607_p1, %p604_p0 }
   0x8   :  { %612 = shalt.err (!%p609_p2)
}
   0x9   :  { %s613_s10 = scalar_lea.vmem %s26_s25, 4096  ;;  %p618_p4 = scmp.lt.s32.totalorder %s26_s25, %s26_s25 }
   0xa   :  { %p614_p3 = scmp.ne.s32.totalorder %s26_s25, %s613_s10  ;;  %p619_p5 = scmp.lt.s32.totalorder %s613_s10, %s613_s10 }
   0xc   :  { %p620_p6 = por %p619_p5, %p618_p4 }
   0xe   :  { %p621_p7 = pnand %p620_p6, %p614_p3 }
  0x10   :  { %624 = shalt.err (!%p621_p7)
}
  0x11   :  { %s676_s11 = smov 128   ;;  %s677_s12 = smov 8  }
  0x12   :  { %31 = dma.hbm_to_vmem [thread:$0]  %s838_s2, 4096, %s26_s25, [#allocation3], %s676_s11, %s676_s11, %s677_s12  }
  0x13   :  { %s678_s15 = smov [#allocation5]   ;;  %s625_s19 = scalar_lea.hbm %s840_s4, 2048 }
  0x14   :  { %s39_s16 = sshll.u32 %s678_s15, 4  ;;  %p626_p8 = scmp.ne.s32.totalorder %s840_s4, %s625_s19  ;;  %s40_s16 = int_to_ptr.vmem [resolvable:$true] %s39_s16 }
  0x15   :  { %p629_p9 = scmp.lt.u32.totalorder %s625_s19, %s840_s4 }
  0x17   :  { %p631_p10 = pnand %p629_p9, %p626_p8 }
  0x19   :  { %634 = shalt.err (!%p631_p10)
}
  0x1a   :  { %s635_s24 = scalar_lea.vmem %s40_s16, 2048  ;;  %p640_p12 = scmp.lt.s32.totalorder %s40_s16, %s40_s16 }
  0x1b   :  { %p636_p11 = scmp.ne.s32.totalorder %s40_s16, %s635_s24  ;;  %p641_p13 = scmp.lt.s32.totalorder %s635_s24, %s635_s24 }
  0x1d   :  { %p642_p0 = por %p641_p13, %p640_p12 }
  0x1f   :  { %p643_p1 = pnand %p642_p0, %p636_p11 }
  0x21   :  { %646 = shalt.err (!%p643_p1)
}
  0x22   :  { %45 = dma.hbm_to_vmem [thread:$0]  %s840_s4, 2048, %s40_s16, [#allocation6], %s676_s11, %s676_s11, %s677_s12  }
  0x23   :  { %669 = dma.done.wait [#allocation3], 4096  }
  0x24   :  { %670 = vsyncadd [#allocation3], 4294963200 }
  0x25   :  { %671 = dma.done.wait [#allocation6], 2048  }
  0x26   :  { %672 = vsyncadd [#allocation6], 4294965248  ;;  %v679_v0 = vmov 0   ;;  %v680_v1 = vmov 2   ;;  %v758_v2 = vld [vmem:[%s836_s0] sm:$0xff]  ;;  %v170_v4 = vld [vmem:[#allocation2 + $0x88] sm:$0xff] }
  0x27   :  { %584 = vset.pattern.permute.xlu0 %v679_v0  ;;  %586 = vset.pattern.permute.xlu1 %v680_v1  ;;  %v169_v3 = vld [vmem:[#allocation2 + $0x80] sm:$0xff]  ;;  %v81_v5 = vadd.s32 64, %v758_v2  ;;  %v154_v7 = vld [vmem:[#allocation2 + $0x8] sm:$0xff]  ;;  %v69_v8 = vadd.s32 32, %v758_v2  ;;  %v171_v10 = vld [vmem:[#allocation2 + $0x90] sm:$0xff]  ;;  %v93_v18 = vadd.s32 96, %v758_v2 }
  0x28   :  { %59 = vperm.xlu0 %584, %v758_v2   ;;  %v153_v6 = vld [vmem:[#allocation2] sm:$0xff]  ;;  %v512_v9 = vpack.c.bf16 %v170_v4, %v169_v3  ;;  %v172_v11 = vld [vmem:[#allocation2 + $0x98] sm:$0xff]  ;;  %v155_v12 = vld [vmem:[#allocation2 + $0x10] sm:$0xff]  ;;  %v681_v19 = vmov 1   ;;  %v682_v24 = vmov 3   ;;  %v117_v25 = vadd.s32 160, %v758_v2 }
  0x29   :  { %83 = vperm.xlu1 %586, %v81_v5   ;;  %v514_v13 = vpack.c.bf16 %v154_v7, %v153_v6  ;;  %v516_v14 = vpack.c.bf16 %v172_v11, %v171_v10  ;;  %v156_v15 = vld [vmem:[#allocation2 + $0x18] sm:$0xff]  ;;  %v173_v16 = vld [vmem:[#allocation2 + $0xa0] sm:$0xff]  ;;  %v174_v17 = vld [vmem:[#allocation2 + $0xa8] sm:$0xff]  ;;  %v105_v28 = vadd.s32 128, %v758_v2  ;;  %v683_v30 = vmov 5  }
  0x2a   :  { %513 = vmatprep.subr.bf16.mxu0 %v512_v9  ;;  %v518_v20 = vpack.c.bf16 %v156_v15, %v155_v12  ;;  %v520_v21 = vpack.c.bf16 %v174_v17, %v173_v16  ;;  %v157_v22 = vld [vmem:[#allocation2 + $0x20] sm:$0xff]  ;;  %v158_v23 = vld [vmem:[#allocation2 + $0x28] sm:$0xff]  ;;  %v175_v26 = vld [vmem:[#allocation2 + $0xb0] sm:$0xff]  ;;  %v684_v36 = vmov 4   ;;  %v129_v38 = vadd.s32 192, %v758_v2 }
  0x2b   :  { %515 = vmatpush3.bf16.msra.mxu0 %v514_v13  ;;  %v176_v27 = vld [vmem:[#allocation2 + $0xb8] sm:$0xff]  ;;  %v522_v29 = vpack.c.bf16 %v158_v23, %v157_v22  ;;  %v159_v32 = vld [vmem:[#allocation2 + $0x30] sm:$0xff]  ;;  %v177_v34 = vld [vmem:[#allocation2 + $0xc0] sm:$0xff]  ;;  %v685_v44 = vmov 6   ;;  %v141_v49 = vadd.s32 224, %v758_v2  ;;  %v686_v53 = vmov 7  }
  0x2c   :  { %585 = vset.pattern.permute.xlu0 %v681_v19  ;;  %517 = vmatprep.subr.bf16.mxu0 %v516_v14  ;;  %v524_v31 = vpack.c.bf16 %v176_v27, %v175_v26  ;;  %v160_v33 = vld [vmem:[#allocation2 + $0x38] sm:$0xff]  ;;  %v178_v35 = vld [vmem:[#allocation2 + $0xc8] sm:$0xff]  ;;  %v161_v40 = vld [vmem:[#allocation2 + $0x40] sm:$0xff]  ;;  %v687_v3 = vmov 0.0|0.0   ;;  %v55_v13 = vlaneseq }
  0x2d   :  { %71 = vperm.xlu0 %585, %v69_v8   ;;  %587 = vset.pattern.permute.xlu1 %v682_v24  ;;  %v526_v37 = vpack.c.bf16 %v160_v33, %v159_v32  ;;  %v528_v39 = vpack.c.bf16 %v178_v35, %v177_v34  ;;  %v162_v41 = vld [vmem:[#allocation2 + $0x48] sm:$0xff]  ;;  %v179_v42 = vld [vmem:[#allocation2 + $0xd0] sm:$0xff]  ;;  %v180_v43 = vld [vmem:[#allocation2 + $0xd8] sm:$0xff] }
  0x2e   :  { %95 = vperm.xlu1 %587, %v93_v18   ;;  %v530_v45 = vpack.c.bf16 %v162_v41, %v161_v40  ;;  %v532_v46 = vpack.c.bf16 %v180_v43, %v179_v42  ;;  %v163_v47 = vld [vmem:[#allocation2 + $0x50] sm:$0xff]  ;;  %v164_v48 = vld [vmem:[#allocation2 + $0x58] sm:$0xff]  ;;  %v181_v50 = vld [vmem:[#allocation2 + $0xe0] sm:$0xff]  ;;  %544 = vmatprep.subr.bf16.mxu1 %v687_v3  ;;  %v773_v14 = vand.u32 127, %v55_v13  ;;  %v688_v18 = vmov 0.0  }
  0x2f   :  { %519 = vmatpush3.bf16.msra.mxu0 %v518_v20  ;;  %v182_v51 = vld [vmem:[#allocation2 + $0xe8] sm:$0xff]  ;;  %v534_v52 = vpack.c.bf16 %v164_v48, %v163_v47  ;;  %v165_v55 = vld [vmem:[#allocation2 + $0x60] sm:$0xff]  ;;  %v183_v57 = vld [vmem:[#allocation2 + $0xf0] sm:$0xff] }
  0x30   :  { %521 = vmatprep.subr.bf16.mxu0 %v520_v21  ;;  %v536_v54 = vpack.c.bf16 %v182_v51, %v181_v50  ;;  %v166_v56 = vld [vmem:[#allocation2 + $0x68] sm:$0xff]  ;;  %v184_v58 = vld [vmem:[#allocation2 + $0xf8] sm:$0xff]  ;;  %v167_v61 = vld [vmem:[#allocation2 + $0x70] sm:$0xff]  ;;  %v57_v15 = vadd.s32 128, %v773_v14 }
  0x31   :  { %589 = vset.pattern.permute.xlu0 %v683_v30  ;;  %v538_v59 = vpack.c.bf16 %v166_v56, %v165_v55  ;;  %v540_v60 = vpack.c.bf16 %v184_v58, %v183_v57  ;;  %v168_v62 = vld [vmem:[#allocation2 + $0x78] sm:$0xff]  ;;  %v263_v63 = vld [vmem:[#allocation5] sm:$0xff]  ;;  %v265_v1 = vld [vmem:[#allocation5 + $0x10] sm:$0xff] }
  0x32   :  { %119 = vperm.xlu0 %589, %v117_v25   ;;  %588 = vset.pattern.permute.xlu1 %v684_v36  ;;  %v542_v2 = vpack.c.bf16 %v168_v62, %v167_v61  ;;  %v266_v5 = vld [vmem:[#allocation5 + $0x18] sm:$0xff]  ;;  %v267_v7 = vld [vmem:[#allocation5 + $0x20] sm:$0xff]  ;;  %v268_v8 = vld [vmem:[#allocation5 + $0x28] sm:$0xff] }
  0x33   :  { %107 = vperm.xlu1 %588, %v105_v28   ;;  %523 = vmatpush3.bf16.msra.mxu0 %v522_v29  ;;  %v548_v6 = vpack.c.bf16 %v266_v5, %v265_v1  ;;  %v551_v9 = vpack.c.bf16 %v268_v8, %v267_v7  ;;  %v269_v10 = vld [vmem:[#allocation5 + $0x30] sm:$0xff]  ;;  %v270_v11 = vld [vmem:[#allocation5 + $0x38] sm:$0xff]  ;;  %v271_v55 = vld [vmem:[#allocation5 + $0x40] sm:$0xff] }
  0x34   :  { %525 = vmatprep.subr.bf16.mxu0 %v524_v31  ;;  %v554_v12 = vpack.c.bf16 %v270_v11, %v269_v10  ;;  %v272_v56 = vld [vmem:[#allocation5 + $0x48] sm:$0xff]  ;;  %v273_v58 = vld [vmem:[#allocation5 + $0x50] sm:$0xff]  ;;  %v275_v61 = vld [vmem:[#allocation5 + $0x60] sm:$0xff] }
  0x35   :  { %v557_v57 = vpack.c.bf16 %v272_v56, %v271_v55  ;;  %v276_v62 = vld [vmem:[#allocation5 + $0x68] sm:$0xff]  ;;  %v278_v1 = vld [vmem:[#allocation5 + $0x78] sm:$0xff]  ;;  %v423_v5 = vld [vmem:[%s839_s3] ss:$0 sm:$0xff] }
  0x36   :  { %592 = vset.pattern.permute.xlu0 %v679_v0  ;;  %v264_v0 = vld [vmem:[#allocation5 + $0x8] sm:$0xff]  ;;  %v424_v10 = vld [vmem:[%s841_s5] ss:$0 sm:$0xff] }
  0x37   :  { %590 = vset.pattern.permute.xlu1 %v685_v44  ;;  %527 = vmatpush3.bf16.msra.mxu0 %v526_v37  ;;  %v545_v4 = vpack.c.bf16 %v264_v0, %v263_v63  ;;  %v563_v63 = vpack.c.bf16 %v276_v62, %v275_v61  ;;  %v277_v0 = vld [vmem:[#allocation5 + $0x70] sm:$0xff] }
  0x38   :  { %131 = vperm.xlu1 %590, %v129_v38   ;;  %529 = vmatprep.subr.bf16.mxu0 %v528_v39 }
  0x39   :  { %546 = vmatpush3.bf16.msra.mxu1 %v545_v4 }
  0x3a   :  { %547 = vmatprep.subr.bf16.mxu1 %v687_v3 }
  0x3b   :  { %531 = vmatpush3.bf16.msra.mxu0 %v530_v45 }
  0x3c   :  { %591 = vset.pattern.permute.xlu1 %v686_v53  ;;  %533 = vmatprep.subr.bf16.mxu0 %v532_v46 }
  0x3d   :  { %143 = vperm.xlu1 %591, %v141_v49   ;;  %549 = vmatpush3.bf16.msra.mxu1 %v548_v6 }
  0x3e   :  { %550 = vmatprep.subr.bf16.mxu1 %v687_v3 }
  0x3f   :  { %535 = vmatpush3.bf16.msra.mxu0 %v534_v52 }
  0x40   :  { %537 = vmatprep.subr.bf16.mxu0 %v536_v54 }
  0x41   :  { %552 = vmatpush3.bf16.msra.mxu1 %v551_v9 }
  0x42   :  { %553 = vmatprep.subr.bf16.mxu1 %v687_v3 }
  0x43   :  { %539 = vmatpush3.bf16.msra.mxu0 %v538_v59  ;;  %v274_v59 = vld [vmem:[#allocation5 + $0x58] sm:$0xff] }
  0x44   :  { %541 = vmatprep.subr.bf16.mxu0 %v540_v60  ;;  %v560_v60 = vpack.c.bf16 %v274_v59, %v273_v58 }
  0x45   :  { %555 = vmatpush3.bf16.msra.mxu1 %v554_v12 }
  0x46   :  { %556 = vmatprep.subr.bf16.mxu1 %v687_v3 }
  0x47   :  { %543 = vmatpush3.bf16.msra.mxu0 %v542_v2  ;;  %v566_v2 = vpack.c.bf16 %v278_v1, %v277_v0 }
  0x49   :  { %558 = vmatpush3.bf16.msra.mxu1 %v557_v57 }
  0x4a   :  { %559 = vmatprep.subr.bf16.mxu1 %v687_v3 }
  0x4d   :  { %561 = vmatpush3.bf16.msra.mxu1 %v560_v60 }
  0x4e   :  { %562 = vmatprep.subr.bf16.mxu1 %v687_v3 }
  0x51   :  { %564 = vmatpush3.bf16.msra.mxu1 %v563_v63 }
  0x52   :  { %565 = vmatprep.subr.bf16.mxu1 %v687_v3 }
  0x55   :  { %567 = vmatpush3.bf16.msra.mxu1 %v566_v2 }
  0xa7   :  { %v60_v16 = vpop.permute.xlu0 %59 }
  0xa8   :  { %vm61_vm0 = vcmp.eq.s32.totalorder %v773_v14, %v60_v16  ;;  %vm62_vm1 = vcmp.eq.s32.totalorder %v57_v15, %v60_v16  ;;  %v84_v17 = vpop.permute.xlu1 %83 }
  0xa9   :  { %v407_v19 = vsel %vm61_vm0, 1.0, %v688_v18  ;;  %v408_v20 = vsel %vm62_vm1, 1.0, %v688_v18  ;;  %vm85_vm2 = vcmp.eq.s32.totalorder %v773_v14, %v84_v17  ;;  %vm86_vm3 = vcmp.eq.s32.totalorder %v57_v15, %v84_v17 }
  0xaa   :  { %v411_v27 = vsel %vm85_vm2, 1.0, %v688_v18  ;;  %v412_v28 = vsel %vm86_vm3, 1.0, %v688_v18  ;;  %vm689_vm0 = vmmov 0   ;;  %vm356_vm1 = vcmp.lt.s32.totalorder %v773_v14, 32 }
  0xab   :  { %509 = vmatprep.mubr.msk.f32.mxu1 %vm689_vm0, %v688_v18 }
  0xac   :  { %v72_v21 = vpop.permute.xlu0 %71 }
  0xad   :  { %vm73_vm4 = vcmp.eq.s32.totalorder %v773_v14, %v72_v21  ;;  %vm74_vm5 = vcmp.eq.s32.totalorder %v57_v15, %v72_v21  ;;  %v96_v24 = vpop.permute.xlu1 %95 }
  0xae   :  { %v409_v22 = vsel %vm73_vm4, 1.0, %v688_v18  ;;  %v410_v23 = vsel %vm74_vm5, 1.0, %v688_v18  ;;  %vm97_vm6 = vcmp.eq.s32.totalorder %v773_v14, %v96_v24  ;;  %vm98_vm7 = vcmp.eq.s32.totalorder %v57_v15, %v96_v24 }
  0xaf   :  { %v79_v25 = vadd.f32 %v409_v22, %v407_v19  ;;  %v80_v26 = vadd.f32 %v410_v23, %v408_v20  ;;  %v413_v32 = vsel %vm97_vm6, 1.0, %v688_v18  ;;  %v414_v33 = vsel %vm98_vm7, 1.0, %v688_v18 }
  0xb1   :  { %v91_v29 = vadd.f32 %v411_v27, %v79_v25  ;;  %v92_v30 = vadd.f32 %v412_v28, %v80_v26  ;;  %v120_v31 = vpop.permute.xlu0 %119 }
  0xb2   :  { %v108_v36 = vpop.permute.xlu1 %107  ;;  %vm121_vm10 = vcmp.eq.s32.totalorder %v773_v14, %v120_v31  ;;  %vm122_vm11 = vcmp.eq.s32.totalorder %v57_v15, %v120_v31 }
  0xb3   :  { %v103_v34 = vadd.f32 %v413_v32, %v91_v29  ;;  %v104_v35 = vadd.f32 %v414_v33, %v92_v30  ;;  %vm109_vm8 = vcmp.eq.s32.totalorder %v773_v14, %v108_v36  ;;  %vm110_vm9 = vcmp.eq.s32.totalorder %v57_v15, %v108_v36 }
  0xb4   :  { %v415_v37 = vsel %vm109_vm8, 1.0, %v688_v18  ;;  %v416_v38 = vsel %vm110_vm9, 1.0, %v688_v18  ;;  %v417_v41 = vsel %vm121_vm10, 1.0, %v688_v18  ;;  %v418_v42 = vsel %vm122_vm11, 1.0, %v688_v18 }
  0xb5   :  { %v115_v39 = vadd.f32 %v415_v37, %v103_v34  ;;  %v116_v40 = vadd.f32 %v416_v38, %v104_v35 }
  0xb7   :  { %v132_v43 = vpop.permute.xlu1 %131  ;;  %v127_v44 = vadd.f32 %v417_v41, %v115_v39  ;;  %v128_v45 = vadd.f32 %v418_v42, %v116_v40 }
  0xb8   :  { %vm133_vm12 = vcmp.eq.s32.totalorder %v773_v14, %v132_v43  ;;  %vm134_vm13 = vcmp.eq.s32.totalorder %v57_v15, %v132_v43 }
  0xb9   :  { %v419_v46 = vsel %vm133_vm12, 1.0, %v688_v18  ;;  %v420_v47 = vsel %vm134_vm13, 1.0, %v688_v18 }
  0xba   :  { %v139_v49 = vadd.f32 %v419_v46, %v127_v44  ;;  %v140_v50 = vadd.f32 %v420_v47, %v128_v45 }
  0xbc   :  { %v144_v48 = vpop.permute.xlu1 %143 }
  0xbd   :  { %vm145_vm14 = vcmp.eq.s32.totalorder %v773_v14, %v144_v48  ;;  %vm146_vm15 = vcmp.eq.s32.totalorder %v57_v15, %v144_v48  ;;  %v376_v15 = vld [vmem:[%s837_s1] sm:$0xff]  ;;  %s690_s1 = smov [#allocation7]  }
  0xbe   :  { %v421_v51 = vsel %vm145_vm14, 1.0, %v688_v18  ;;  %v422_v52 = vsel %vm146_vm15, 1.0, %v688_v18  ;;  %s393_s5 = sshll.u32 %s690_s1, 4  ;;  %s394_s5 = int_to_ptr.vmem [resolvable:$true] %s393_s5 }
  0xbf   :  { %v151_v53 = vadd.f32 %v421_v51, %v139_v49  ;;  %v152_v54 = vadd.f32 %v422_v52, %v140_v50  ;;  %s647_s8 = scalar_lea.vmem %s394_s5, 128  ;;  %p652_p3 = scmp.lt.s32.totalorder %s394_s5, %s394_s5 }
  0xc0   :  { %p648_p2 = scmp.ne.s32.totalorder %s394_s5, %s647_s8  ;;  %p653_p4 = scmp.lt.s32.totalorder %s647_s8, %s647_s8 }
  0xc1   :  { %256 = vmatprep.mubr.f32.mxu0 %v152_v54 }
  0xc2   :  { %257 = vmatmul.mubr.f32.vlgmr.msra.gmra.mrb[0].mxu0 %v151_v53  ;;  %p654_p5 = por %p653_p4, %p652_p3 }
  0xc4   :  { %p655_p6 = pnand %p654_p5, %p648_p2 }
 0x195   :  { %v457_v4 = vpop.f32.mrb[0].mxu0 }
 0x196   :  { %v458_v6 = vpop.f32.mrb[1].mxu0 }
 0x197   :  { %v459_v7 = vadd.f32 %v458_v6, %v457_v4 }
 0x199   :  { %v259_v8 = vadd.f32 %v459_v7, %v423_v5 }
 0x19b   :  { %593 = vtanh.f32 %v259_v8 }
 0x1a5   :  { %v594_v9 = vpop.eup %593 }
 0x1a6   :  { %510 = vmatmul.mubr.f32.vlgmr.msra.gmra.mrb[0].mxu1 %v594_v9 }
 0x279   :  { %v352_v11 = vpop.f32.mrb[0].mxu1 }
 0x27a   :  { %v353_v3 = vadd.f32 %v424_v10, %v352_v11  ;;  %v511_v12 = vpop.f32.mrb[1].mxu1 }
 0x27c   :  { %v357_v13 = vsel %vm356_vm1, %v353_v3, -1e+30 }
 0x27d   :  { %358 = vmax.xlane.f32.xlu0 %v357_v13 }
 0x293   :  { %378 = vperm.xlu0 %592, %v376_v15  }
 0x30a   :  { %v359_v16 = vpop.xlane.xlu0 %358 }
 0x30b   :  { %v360_v17 = vsub.f32 %v353_v3, %v359_v16 }
 0x30d   :  { %v361_v18 = vmul.f32 1.442695, %v360_v17 }
 0x30f   :  { %595 = vpow2.f32 %v361_v18 }
 0x312   :  { %v379_v25 = vpop.permute.xlu0 %378 }
 0x313   :  { %vm380_vm2 = vcmp.eq.s32.totalorder %v773_v14, %v379_v25 }
 0x319   :  { %v596_v19 = vpop.eup %595 }
 0x31a   :  { %v363_v20 = vsel %vm356_vm1, %v596_v19, 0.0 }
 0x31b   :  { %364 = vadd.xlane.f32.xlu1 %v363_v20 }
 0x3a8   :  { %v365_v21 = vpop.xlane.xlu1 %364 }
 0x3a9   :  { %597 = vrcp.f32 %v365_v21 }
 0x3b3   :  { %v598_v22 = vpop.eup %597 }
 0x3b4   :  { %v367_v23 = vmul.f32 %v598_v22, %v363_v20 }
 0x3b6   :  { %368 = vst [vmem:[#allocation7] sm:$0xff] %v367_v23  ;;  %v369_v24 = vmul.f32 1.442695, %v367_v23  ;;  %v381_v28 = vsel %vm380_vm2, %v367_v23, 0.0 }
 0x3b8   :  { %599 = vpow2.f32 %v369_v24 }
 0x3c2   :  { %v600_v26 = vpop.eup %599 }
 0x3c3   :  { %v371_v27 = vsel %vm356_vm1, %v600_v26, 0.0 }
 0x3c4   :  { %372 = vadd.xlane.f32.xlu1 %v371_v27 }
 0x3c8   :  { %382 = vadd.xlane.f32.xlu1 %v381_v28 }
 0x3c9   :  { %658 = shalt.err (!%p655_p6)
}
 0x3ca   :  { %s659_s11 = scalar_lea.hbm %s842_s6, 128 }
 0x3cb   :  { %p660_p7 = scmp.ne.s32.totalorder %s842_s6, %s659_s11  ;;  %p663_p8 = scmp.lt.u32.totalorder %s659_s11, %s842_s6 }
 0x3cd   :  { %p665_p9 = pnand %p663_p8, %p660_p7 }
 0x3cf   :  { %668 = shalt.err (!%p665_p9)
}
 0x3d0   :  { %396 = dma.vmem_to_hbm [thread:$0]  %s394_s5, 128, %s842_s6, [#allocation4]   ;;  %vm385_vm3 = vcmask 7168  }
 0x451   :  { %v373_v14 = vpop.xlane.xlu1 %372 }
 0x452   :  { %601 = vlog2.f32 %v373_v14 }
 0x455   :  { %v383_v31 = vpop.xlane.xlu1 %382 }
 0x45c   :  { %v602_v29 = vpop.eup %601 }
 0x45d   :  { %v375_v30 = vmul.f32 0.6931472, %v602_v29 }
 0x45f   :  { %v384_v32 = vsub.f32 %v375_v30, %v383_v31 }
 0x461   :  { %386 = vst.msk [vmem:[%s843_s7] sm:$0xff] %vm385_vm3, %v384_v32 }
 0x462   :  { %673 = dma.done.wait [#allocation4], 128  }
 0x463   :  { %674 = vsyncadd [#allocation4], 4294967168 }
 0x464   :  { %404 = vsyncpa [#allocation3], 1 }
 0x465   :  { %405 = vsyncpa [#allocation6], 1 }
 0x466   :  { %406 = vsyncpa [#allocation4], 1 }

</bundles_post_ra>
